<compile_context>
chip_gen: v5e
topology: v5e:2x2
jax: 0.10.0
libtpu: 0.0.40
codegen_flags: <defaults>
</compile_context>

<pallas_src>
import math

import jax
import jax.numpy as jnp
from jax.experimental import pallas as pl
from jax.experimental.pallas import tpu as pltpu


_VMEM_TILE_BUDGET = 40 * 1024 * 1024   # double-buffered-tile budget, v7x-safe
_VMEM_LIMIT_BYTES = 48 * 1024 * 1024   # scoped VMEM limit (< 64 MiB physical on v7x)
_TM_MAX = 512                          # max batch-tile rows


def _round_up(x, m):
    return ((x + m - 1) // m) * m


def _pick_tile(rounded, candidates):
    for c in candidates:
        if rounded >= c and rounded % c == 0:
            return c
    return candidates[-1]


# ----------------------------- kernels --------------------------------------

def _linear_fold_k_kernel(x_ref, w_ref, b_ref, o_ref):
    # Whole K reduction in one block: x [tm, Kp] @ w [Kp, tn] + b [1, tn].
    acc = jnp.dot(x_ref[...], w_ref[...], preferred_element_type=jnp.float32)
    o_ref[...] = (acc + b_ref[...].astype(jnp.float32)).astype(o_ref.dtype)


def _linear_split_k_f32out_kernel(x_ref, w_ref, b_ref, o_ref):
    # Split-K, float32 output: accumulate directly into o_ref (no scratch).
    k = pl.program_id(2)

    @pl.when(k == 0)
    def _():
        o_ref[...] = jnp.zeros_like(o_ref)

    o_ref[...] += jnp.dot(x_ref[...], w_ref[...],
                          preferred_element_type=jnp.float32)

    @pl.when(k == pl.num_programs(2) - 1)
    def _():
        o_ref[...] += b_ref[...].astype(jnp.float32)


def _linear_split_k_acc_kernel(x_ref, w_ref, b_ref, o_ref, acc_ref):
    # Split-K with f32 scratch accumulator (used for non-f32 output dtypes).
    k = pl.program_id(2)

    @pl.when(k == 0)
    def _():
        acc_ref[...] = jnp.zeros_like(acc_ref)

    acc_ref[...] += jnp.dot(x_ref[...], w_ref[...],
                            preferred_element_type=jnp.float32)

    @pl.when(k == pl.num_programs(2) - 1)
    def _():
        o_ref[...] = (acc_ref[...] + b_ref[...].astype(jnp.float32)).astype(o_ref.dtype)


# --------------------------- parameter prep ---------------------------------

def prepare_params(weight, bias, *, compute_dtype=None, tk=None):
    """One-time prep: transpose weight to [K, N], pick N/K tiles, pad once.

    weight: [out_features, in_features] (PyTorch layout), bias: [out_features].
    compute_dtype: optional MXU operand dtype (e.g. jnp.bfloat16); accumulation
    stays float32. tk: optional K-tile override (forces split-K if < K).
    """
    N, K = weight.shape
    assert bias.shape == (N,)

    Nr = _round_up(N, 128)
    Kr = _round_up(K, 128)

    # N tile: largest of {512,256,128} dividing the rounded N (<=512 => whole N).
    tn = Nr if Nr <= 512 else _pick_tile(Nr, (512, 256, 128))
    Np = _round_up(Nr, tn)

    itemsize = jnp.dtype(compute_dtype or weight.dtype).itemsize
    Kp = Kr
    if tk is None:
        # Fold the whole reduction when double-buffered x/w tiles + output
        # tile fit the (v7x-safe) VMEM budget; otherwise split K.
        def foot(k_tile):
            return (2 * itemsize * k_tile * (_TM_MAX + tn)
                    + 2 * 4 * _TM_MAX * tn + 2 * 8 * tn * 4)

        if foot(Kp) <= _VMEM_TILE_BUDGET:
            tk = Kp
        else:
            tk = min(512, Kp)
            while tk + 512 <= Kp and foot(tk + 512) <= _VMEM_TILE_BUDGET:
                tk += 512
            Kp = _round_up(Kr, tk)
    else:
        tk = min(_round_up(tk, 128), Kp)
        Kp = _round_up(Kr, tk)

    # Transpose once to canonical [K, N]; pad once at parameter-load time.
    w_kn = weight.T
    if compute_dtype is not None:
        w_kn = w_kn.astype(compute_dtype)
    if (Kp, Np) != (K, N):
        w_kn = jnp.pad(w_kn, ((0, Kp - K), (0, Np - N)))
    b2 = bias if Np == N else jnp.pad(bias, (0, Np - N))
    b2 = b2.reshape(1, Np)

    return dict(w=w_kn, b=b2, N=N, K=K, Np=Np, Kp=Kp, tn=tn, tk=tk,
                compute_dtype=compute_dtype)


# ------------------------------- apply --------------------------------------

def robust_linear_apply(x, params):
    """y = x @ W.T + b with prepared (pre-transposed, pre-padded) params."""
    M, K = x.shape
    assert K == params["K"], "in_features mismatch"
    N, Np, Kp = params["N"], params["Np"], params["Kp"]
    tn, tk = params["tn"], params["tk"]
    w, b2 = params["w"], params["b"]
    compute_dtype = params["compute_dtype"]
    out_dtype = x.dtype

    # Per-call M tile: whole (8-rounded) batch when it fits, else a large tile
    # that divides it when possible (avoids padding + output slicing).
    Mr = _round_up(M, 8)
    if Mr <= _TM_MAX:
        tm = Mr
    else:
        tm = next((c for c in (512, 384, 256) if Mr % c == 0), 512)
    Mp = _round_up(Mr, tm)

    # Keep >=2 blocks on the parallel axes when possible so both v7x
    # TensorCores get work (near-zero cost on single-TC v5e/v6e).
    while ((Mp // tm) * (Np // tn) < 2 and tn > 128
           and (tn // 2) % 128 == 0 and Np % (tn // 2) == 0):
        tn //= 2

    xp = x
    if compute_dtype is not None:
        xp = xp.astype(compute_dtype)
    if (Mp, Kp) != (M, K):
        xp = jnp.pad(xp, ((0, Mp - M), (0, Kp - K)))

    grid_m, grid_n, grid_k = Mp // tm, Np // tn, Kp // tk
    itemsize = jnp.dtype(xp.dtype).itemsize
    cost = pl.CostEstimate(
        flops=2 * Mp * Np * Kp,
        transcendentals=0,
        # Account for tile re-reads: x is re-read per N block, W per M block.
        bytes_accessed=(itemsize * (Mp * Kp * grid_n + Np * Kp * grid_m)
                        + 4 * (Mp * Np + Np)),
    )

    if grid_k == 1:
        kernel = _linear_fold_k_kernel
        grid = (grid_m, grid_n)
        in_specs = [
            pl.BlockSpec((tm, Kp), lambda i, j: (i, 0)),   # x tile
            pl.BlockSpec((Kp, tn), lambda i, j: (0, j)),   # W [K, N] tile
            pl.BlockSpec((1, tn), lambda i, j: (0, j)),    # bias tile
        ]
        out_specs = pl.BlockSpec((tm, tn), lambda i, j: (i, j))
        scratch = []
        dims = ("parallel", "parallel")
    else:
        if jnp.dtype(out_dtype) == jnp.dtype(jnp.float32):
            kernel = _linear_split_k_f32out_kernel
            scratch = []
        else:
            kernel = _linear_split_k_acc_kernel
            scratch = [pltpu.VMEM((tm, tn), jnp.float32)]
        grid = (grid_m, grid_n, grid_k)
        in_specs = [
            pl.BlockSpec((tm, tk), lambda i, j, k: (i, k)),
            pl.BlockSpec((tk, tn), lambda i, j, k: (k, j)),
            pl.BlockSpec((1, tn), lambda i, j, k: (0, j)),
        ]
        out_specs = pl.BlockSpec((tm, tn), lambda i, j, k: (i, j))
        dims = ("parallel", "parallel", "arbitrary")

    out = pl.pallas_call(
        kernel,
        out_shape=jax.ShapeDtypeStruct((Mp, Np), out_dtype),
        grid_spec=pltpu.PrefetchScalarGridSpec(
            num_scalar_prefetch=0,
            grid=grid,
            in_specs=in_specs,
            out_specs=out_specs,
            scratch_shapes=scratch,
        ),
        compiler_params=pltpu.CompilerParams(
            dimension_semantics=dims,
            vmem_limit_bytes=_VMEM_LIMIT_BYTES,
        ),
        cost_estimate=cost,
    )(xp, w, b2)

    if (Mp, Np) != (M, N):
        out = out[:M, :N]
    return out


def robust_linear(x, weight, bias, **prep_kwargs):
    """One-shot convenience wrapper (prep + apply).  Prefer prepare_params()
    once per layer + robust_linear_apply() per call in real use."""
    return robust_linear_apply(x, prepare_params(weight, bias, **prep_kwargs))


def init_params(key, in_features, out_features):
    """Deterministic init mirroring nn.Linear / RobustLinear.reset_parameters."""
    kw, kb = jax.random.split(key)
    bound = 1.0 / math.sqrt(in_features)   # kaiming_uniform_(a=sqrt(5)) on [out, in]
    weight = jax.random.uniform(
        kw, (out_features, in_features), jnp.float32, -bound, bound)
    bias = jax.random.uniform(kb, (out_features,), jnp.float32, -bound, bound)
    return weight, bias


if __name__ == "__main__":
    key = jax.random.PRNGKey(0)
    k_x, k_p = jax.random.split(key)

    # Small demo shapes (Pallas overhead dominates here; the kernel pays off
    # at production-sized linears).
    B, in_features, out_features = 8, 32, 16
    x = jax.random.normal(k_x, (B, in_features), jnp.float32)
    weight, bias = init_params(k_p, in_features, out_features)

    params = prepare_params(weight, bias)          # transpose + pad once
    y = jax.block_until_ready(robust_linear_apply(x, params))

    y_ref = x @ weight.T + bias                    # norm='L2' => plain linear
    assert y.shape == (B, out_features)
    assert jnp.allclose(y, y_ref, atol=1e-5, rtol=1e-5)

    # Production-sized path: folded-K (single dot per output tile), multi-block
    # N axis, no padding and no output slice (tiles divide the real shapes).
    k_x2, k_p2 = jax.random.split(k_p)
    B2, in2, out2 = 512, 1024, 768
    x2 = jax.random.normal(k_x2, (B2, in2), jnp.float32)
    w2, b2 = init_params(k_p2, in2, out2)
    p2 = prepare_params(w2, b2)
    y2 = jax.block_until_ready(robust_linear_apply(x2, p2))
    y2_ref = x2 @ w2.T + b2
    assert jnp.allclose(y2, y2_ref, atol=5e-4, rtol=5e-4)

    # Forced split-K path (exercises the K-reduction kernel with direct f32
    # accumulation into the output block).
    k_x3, k_p3 = jax.random.split(k_p2)
    B3, in3, out3 = 256, 768, 256
    x3 = jax.random.normal(k_x3, (B3, in3), jnp.float32)
    w3, b3 = init_params(k_p3, in3, out3)
    p3 = prepare_params(w3, b3, tk=256)
    y3 = jax.block_until_ready(robust_linear_apply(x3, p3))
    y3_ref = x3 @ w3.T + b3
    assert jnp.allclose(y3, y3_ref, atol=5e-4, rtol=5e-4)

    print("KERNEL_OK")
</pallas_src>

<mosaic_0001>
module attributes {stable_mosaic.version = 11 : i64} {
  func.func @_linear_fold_k_kernel(%arg0: i32, %arg1: i32, %arg2: memref<8x128xf32, #tpu.memory_space<vmem>>, %arg3: memref<128x128xf32, #tpu.memory_space<vmem>>, %arg4: memref<1x128xf32, #tpu.memory_space<vmem>>, %arg5: memref<8x128xf32, #tpu.memory_space<vmem>>) attributes {dimension_semantics = [#tpu.dimension_semantics<parallel>, #tpu.dimension_semantics<parallel>], iteration_bounds = array<i64: 1, 1>, scalar_prefetch = 0 : i64, scratch_operands = 0 : i64, tpu.core_type = #tpu.core_type<tc>, window_params = [{transform_indices = @transform_0, window_bounds = array<i64: 8, 128>}, {transform_indices = @transform_1, window_bounds = array<i64: 128, 128>}, {transform_indices = @transform_2, window_bounds = array<i64: 1, 128>}, {transform_indices = @transform_3, window_bounds = array<i64: 8, 128>}]} {
    %c0 = arith.constant 0 : index
    %c0_0 = arith.constant 0 : index
    %0 = vector.load %arg2[%c0, %c0_0] : memref<8x128xf32, #tpu.memory_space<vmem>>, vector<8x128xf32>
    %c0_1 = arith.constant 0 : index
    %c0_2 = arith.constant 0 : index
    %1 = vector.load %arg3[%c0_1, %c0_2] : memref<128x128xf32, #tpu.memory_space<vmem>>, vector<128x128xf32>
    %cst = arith.constant dense<0.000000e+00> : vector<8x128xf32>
    %2 = tpu.matmul %0, %1, %cst {dimension_numbers = #tpu.dot_dimension_numbers<[1], [0], [0], [1], [0, 0, 1, 1], [], []>} : vector<8x128xf32>, vector<128x128xf32>, vector<8x128xf32> -> vector<8x128xf32>
    %c0_3 = arith.constant 0 : index
    %c0_4 = arith.constant 0 : index
    %3 = vector.load %arg4[%c0_3, %c0_4] : memref<1x128xf32, #tpu.memory_space<vmem>>, vector<1x128xf32>
    %4 = vector.broadcast %3 : vector<1x128xf32> to vector<8x128xf32>
    %5 = arith.addf %2, %4 : vector<8x128xf32>
    %c0_5 = arith.constant 0 : index
    %c0_6 = arith.constant 0 : index
    %6 = vector.load %arg5[%c0_5, %c0_6] : memref<8x128xf32, #tpu.memory_space<vmem>>, vector<8x128xf32>
    tpu.vector_store %arg5[%c0_5, %c0_6], %5 {strides = array<i32>} : memref<8x128xf32, #tpu.memory_space<vmem>>, vector<8x128xf32>,
    return
  }
  func.func @transform_0(%arg0: i32, %arg1: i32) -> (i32, i32) {
    %c0_i32 = arith.constant 0 : i32
    %c0_i32_0 = arith.constant 0 : i32
    return %arg0, %c0_i32 : i32, i32
  }
  func.func @transform_1(%arg0: i32, %arg1: i32) -> (i32, i32) {
    %c0_i32 = arith.constant 0 : i32
    %c0_i32_0 = arith.constant 0 : i32
    return %c0_i32, %arg1 : i32, i32
  }
  func.func @transform_2(%arg0: i32, %arg1: i32) -> (i32, i32) {
    %c0_i32 = arith.constant 0 : i32
    %c0_i32_0 = arith.constant 0 : i32
    return %c0_i32, %arg1 : i32, i32
  }
  func.func @transform_3(%arg0: i32, %arg1: i32) -> (i32, i32) {
    %c0_i32 = arith.constant 0 : i32
    return %arg0, %arg1 : i32, i32
  }
}

</mosaic_0001>

<bundles_post_ra>
// kernel: tpu_custom_call.1
= control target key start
LH: loop header
LB: loop body
LE: loop exit
PB: predicated region body
PF: predicated region fallthrough
CT: control target
= control target key end

     0   :  { %8 = vsyncpa [#allocation3], 0  ;;  %s226_s0 = inlined_call_operand.hbm [shape: f32[8,128], index: 0, kind: input, shape index: {}]   ;;  %s227_s1 = inlined_call_operand.hbm [shape: f32[128,128], index: 1, kind: input, shape index: {}]   ;;  %s228_s2 = inlined_call_operand.vmem [shape: f32[1,128], index: 2, kind: input, shape index: {}]   ;;  %s229_s3 = inlined_call_operand.hbm [shape: f32[8,128], index: 3, kind: output, shape index: {}]  }
   0x1   :  { %9 = vsyncpa [#allocation6], 0 }
   0x2   :  { %10 = vsyncpa [#allocation4], 0  ;;  %s16_s14 = sshll.u32 %s226_s0, 4  ;;  %s189_s15 = smov [#allocation2]   ;;  %s17_s14 = int_to_ptr.hbm [resolvable:$true] %s16_s14 }
   0x3   :  { %s18_s16 = sshll.u32 %s189_s15, 4  ;;  %s26_s19 = sshll.u32 %s227_s1, 4  ;;  %s19_s16 = int_to_ptr.vmem [resolvable:$true] %s18_s16  ;;  %s27_s19 = int_to_ptr.hbm [resolvable:$true] %s26_s19 }
   0x4   :  { %21 = dma.hbm_to_vmem [thread:$0]  %s17_s14, 128, %s19_s16, [#allocation3]  }
   0x5   :  { %s190_s20 = smov [#allocation5]   ;;  %s191_s22 = smov 128  }
   0x6   :  { %s28_s21 = sshll.u32 %s190_s20, 4  ;;  %s192_s23 = smov 8   ;;  %s29_s21 = int_to_ptr.vmem [resolvable:$true] %s28_s21 }
   0x7   :  { %34 = dma.hbm_to_vmem [thread:$0]  %s27_s19, 2048, %s29_s21, [#allocation6], %s191_s22, %s191_s22, %s192_s23  }
   0x8   :  { %183 = dma.done.wait [#allocation3], 128  }
   0x9   :  { %184 = vsyncadd [#allocation3], 4294967168 }
   0xa   :  { %185 = dma.done.wait [#allocation6], 2048  }
   0xb   :  { %186 = vsyncadd [#allocation6], 4294965248  ;;  %v61_v0 = vld [vmem:[#allocation5 + $0x78] sm:$0xff]  ;;  %v60_v1 = vld [vmem:[#allocation5 + $0x70] sm:$0xff]  ;;  %s193_s24 = smov [#allocation7]   ;;  %s94_s28 = sshll.u32 %s229_s3, 4  ;;  %s95_s28 = int_to_ptr.hbm [resolvable:$true] %s94_s28 }
   0xc   :  { %66 = vmatpush.msra.mxu0 %v61_v0  ;;  %v59_v2 = vld [vmem:[#allocation5 + $0x68] sm:$0xff]  ;;  %v58_v3 = vld [vmem:[#allocation5 + $0x60] sm:$0xff]  ;;  %v57_v4 = vld [vmem:[#allocation5 + $0x58] sm:$0xff]  ;;  %s92_s25 = sshll.u32 %s193_s24, 4  ;;  %s93_s25 = int_to_ptr.vmem [resolvable:$true] %s92_s25 }
   0xd   :  { %v56_v5 = vld [vmem:[#allocation5 + $0x50] sm:$0xff]  ;;  %v55_v6 = vld [vmem:[#allocation5 + $0x48] sm:$0xff]  ;;  %v54_v7 = vld [vmem:[#allocation5 + $0x40] sm:$0xff] }
   0xe   :  { %67 = vmatpush.msra.mxu0 %v60_v1  ;;  %v53_v8 = vld [vmem:[#allocation5 + $0x38] sm:$0xff]  ;;  %v52_v9 = vld [vmem:[#allocation5 + $0x30] sm:$0xff]  ;;  %v51_v10 = vld [vmem:[#allocation5 + $0x28] sm:$0xff] }
   0xf   :  { %v50_v11 = vld [vmem:[#allocation5 + $0x20] sm:$0xff]  ;;  %v49_v12 = vld [vmem:[#allocation5 + $0x18] sm:$0xff]  ;;  %v48_v13 = vld [vmem:[#allocation5 + $0x10] sm:$0xff] }
  0x10   :  { %68 = vmatpush.msra.mxu0 %v59_v2  ;;  %v47_v14 = vld [vmem:[#allocation5 + $0x8] sm:$0xff]  ;;  %v46_v15 = vld [vmem:[#allocation5] sm:$0xff]  ;;  %v45_v16 = vld [vmem:[#allocation2] sm:$0xff] }
  0x11   :  { %v110_v17 = vld [vmem:[%s228_s2] ss:$0 sm:$0xff] }
  0x12   :  { %69 = vmatpush.msra.mxu0 %v58_v3 }
  0x14   :  { %70 = vmatpush.msra.mxu0 %v57_v4 }
  0x16   :  { %71 = vmatpush.msra.mxu0 %v56_v5 }
  0x18   :  { %72 = vmatpush.msra.mxu0 %v55_v6 }
  0x1a   :  { %73 = vmatpush.msra.mxu0 %v54_v7 }
  0x1c   :  { %74 = vmatpush.msra.mxu0 %v53_v8 }
  0x1e   :  { %75 = vmatpush.msra.mxu0 %v52_v9 }
  0x20   :  { %76 = vmatpush.msra.mxu0 %v51_v10 }
  0x22   :  { %77 = vmatpush.msra.mxu0 %v50_v11 }
  0x24   :  { %78 = vmatpush.msra.mxu0 %v49_v12 }
  0x26   :  { %79 = vmatpush.msra.mxu0 %v48_v13 }
  0x28   :  { %80 = vmatpush.msra.mxu0 %v47_v14 }
  0x2a   :  { %81 = vmatpush.msra.mxu0 %v46_v15 }
  0x2b   :  { %82 = vmatmul.f32.vlgmr.msra.gmra.mxu0 %v45_v16 }
  0xa8   :  { %v83_v18 = vpop.f32.mrf.mxu0 }
  0xa9   :  { %v84_v19 = vadd.f32 %v110_v17, %v83_v18 }
  0xab   :  { %86 = vst [vmem:[#allocation7] sm:$0xff] %v84_v19 }
  0xac   :  { %97 = dma.vmem_to_hbm [thread:$0]  %s93_s25, 128, %s95_s28, [#allocation4]  }
  0xad   :  { %187 = dma.done.wait [#allocation4], 128  }
  0xae   :  { %188 = vsyncadd [#allocation4], 4294967168 }
  0xaf   :  { %102 = vsyncpa [#allocation3], 1 }
  0xb0   :  { %103 = vsyncpa [#allocation6], 1 }
  0xb1   :  { %104 = vsyncpa [#allocation4], 1 }

</bundles_post_ra>
